<compile_context>
chip_gen: v5e
topology: v5e:2x2
jax: 0.10.0
libtpu: 0.0.40
codegen_flags: <defaults>
</compile_context>

<pallas_src>
import functools

import numpy as np
import jax
import jax.numpy as jnp
from jax import lax
from jax.experimental import pallas as pl
from jax.experimental.pallas import tpu as pltpu

NEG_INF = -1e30  # large finite negative: avoids inf-inf NaNs in the online LSE


def _round_up(x, m):
    return (x + m - 1) // m * m


def _tpu_generation():
    try:
        kind = jax.devices()[0].device_kind.lower()
    except Exception:
        return "unknown"
    if "v7" in kind or "7x" in kind:
        return "v7x"
    if "v6" in kind:
        return "v6e"
    if "v5" in kind:
        return "v5e"
    return "unknown"


def _vmem_bytes(tb, tc, p_pad, n_wbuf):
    """Estimated VMEM working set for one (TB, TC) configuration."""
    return (2 * tb * p_pad * 2          # feature double buffer (bf16)
            + n_wbuf * p_pad * tc * 2   # weight buffers (bf16)
            + 2 * tc * 4                # bias double buffer (f32)
            + 2 * tb * 4                # label double buffer (int32)
            + 2 * 8 * 128 * 4           # output double buffer (f32)
            + tb * tc * 4               # (TB, TC) f32 logits temporary
            + 4 * tb * 4)               # m/l/tgt accumulators (+ slack)


def _local_ce_kernel(feats_ref, w_ref, b_ref, lbl_ref, out_ref,
                     m_sc, l_sc, tgt_sc, *, n_rows, tb, tc, bf16_exp):
    """One (batch tile, class tile) grid step of the fused linear + CE loss."""
    bi = pl.program_id(0)
    ci = pl.program_id(1)

    @pl.when(ci == 0)
    def _():
        m_sc[...] = jnp.full_like(m_sc, NEG_INF)
        l_sc[...] = jnp.zeros_like(l_sc)
        tgt_sc[...] = jnp.zeros_like(tgt_sc)

    # (TB, P) bf16 @ (P, TC) bf16 -> f32 on the MXU; bias add in f32.
    # Padded class columns already carry NEG_INF in the bias (and zero weight
    # columns), so no in-kernel class mask / select is needed.
    logits = jnp.dot(feats_ref[...], w_ref[...],
                     preferred_element_type=jnp.float32) + b_ref[...]

    # Target logit (integer labels; no in-kernel argmax / one-hot traffic).
    col = lax.broadcasted_iota(jnp.int32, (tb, tc), 1) + ci * tc
    lbl = lbl_ref[...]                                            # (TB, 1) int32
    tgt_sc[...] += jnp.sum(jnp.where(col == lbl, logits, 0.0),
                           axis=-1, keepdims=True)

    # Online log-sum-exp across class tiles.
    m_prev = m_sc[...]
    m_new = jnp.maximum(m_prev, jnp.max(logits, axis=-1, keepdims=True))
    if bf16_exp:
        # bf16 exp path (v6e/v7x bf16 VPU/EUP); running sums stay f32.
        p_sum = jnp.sum(
            jnp.exp((logits - m_new).astype(jnp.bfloat16)).astype(jnp.float32),
            axis=-1, keepdims=True)
    else:
        p_sum = jnp.sum(jnp.exp(logits - m_new), axis=-1, keepdims=True)
    l_sc[...] = l_sc[...] * jnp.exp(m_prev - m_new) + p_sum
    m_sc[...] = m_new

    @pl.when(ci == pl.num_programs(1) - 1)
    def _():
        # Per-row NLL = lse - target_logit; zero out padded batch rows, then
        # reduce to a per-batch-tile partial sum stored as a lane-dense block.
        row = lax.broadcasted_iota(jnp.int32, (tb, 1), 0) + bi * tb
        row_mask = (row < n_rows).astype(jnp.float32)
        nll = (m_sc[...] + jnp.log(l_sc[...]) - tgt_sc[...]) * row_mask  # (TB, 1)
        tile_sum = jnp.sum(nll, axis=0, keepdims=True)                   # (1, 1)
        out_ref[...] = jnp.broadcast_to(tile_sum, (8, 128)).astype(jnp.float32)


def make_local_cross_entropy(weight_t, bias, projection_size, n_channels):
    """Plan tiling once, hoist the padded/cast params, return jitted forward.

    weight_t: (P, out_size) transposed Linear weight; bias: (out_size,).
    """
    gen = _tpu_generation()
    P, C = weight_t.shape

    pool_w = int(np.sqrt(projection_size // n_channels))
    pool_h = projection_size // n_channels // pool_w

    # ---- generation-aware VMEM budget (scoped limit + tile-fit budget) ----
    if gen == "v7x":
        vmem_limit, budget = 48 * 2**20, 40 * 2**20   # 64 MiB physical part
    elif gen in ("v5e", "v6e"):
        vmem_limit, budget = 96 * 2**20, 80 * 2**20   # 128 MiB physical parts
    else:
        vmem_limit, budget = 32 * 2**20, 24 * 2**20   # conservative default

    tb_cap = 128 if gen == "v5e" else 256             # v5e MXU is 4x128^2

    P_pad = _round_up(P, 128)
    C_pad = _round_up(C, 128)

    # Largest class tile (multiple of 128) whose full working set fits the
    # budget, assuming the largest batch tile we might ever pick (tb_cap).
    fixed = _vmem_bytes(tb_cap, 0, P_pad, 2)
    per_tc = 2 * P_pad * 2 + 2 * 4 + tb_cap * 4       # weight(2 buf)+bias+logits
    if budget > fixed + 128 * per_tc:
        max_tc = ((budget - fixed) // per_tc) // 128 * 128
    else:
        max_tc = 128
    TC = min(C_pad, max_tc)
    C_pad = _round_up(C_pad, TC)
    num_c = C_pad // TC

    # ---- hoisted, call-invariant padded params (pad+cast done once) ----
    # Padded-class mask is folded into the bias: padded columns get NEG_INF,
    # padded weight columns stay exactly zero.
    w_p = jnp.zeros((P_pad, C_pad), jnp.bfloat16).at[:P, :C].set(
        weight_t.astype(jnp.bfloat16))
    b_p = jnp.full((1, C_pad), NEG_INF, dtype=jnp.float32).at[0, :C].set(
        bias.astype(jnp.float32))

    def forward(z, y_onehot, use_bf16_exp=False):
        B, Cch, H, W = z.shape
        assert Cch == n_channels
        assert H % pool_h == 0 and W % pool_w == 0, \
            "demo requires evenly-divisible adaptive pooling"
        kh, kw = H // pool_h, W // pool_w
        # AdaptiveAvgPool2d((pool_h, pool_w)), evenly-divisible case + Flatten
        pooled = z.reshape(B, Cch, pool_h, kh, pool_w, kw).mean(axis=(3, 5))
        feats = pooled.reshape(B, Cch * pool_h * pool_w)      # (B, P), channel-major

        # torch.argmax(y_onehot, dim=-1) (first-occurrence tie-break).
        labels = jnp.argmax(y_onehot, axis=-1).astype(jnp.int32)

        # ---- batch tiling: multiples of 16 for full bf16 sublane packing ----
        B_pad = _round_up(B, 16)
        TB = min(B_pad, tb_cap)
        if gen == "v7x" and B_pad > 16:
            # keep >= 2 batch tiles so the "parallel" axis feeds both TCs
            TB = min(TB, max(16, _round_up((B_pad + 1) // 2, 16)))
        B_pad = _round_up(B_pad, TB)
        num_b = B_pad // TB

        feats_p = jnp.zeros((B_pad, P_pad), jnp.bfloat16).at[:B, :P].set(
            feats.astype(jnp.bfloat16))
        lbl_p = jnp.zeros((B_pad, 1), jnp.int32).at[:B, 0].set(labels)

        # Deeper weight buffering only when it helps (many class tiles) and fits.
        if num_c >= 3 and _vmem_bytes(TB, TC, P_pad, 3) <= budget:
            w_spec = pl.BlockSpec((P_pad, TC), lambda b, c: (0, c),
                                  pipeline_mode=pl.Buffered(3))
        else:
            w_spec = pl.BlockSpec((P_pad, TC), lambda b, c: (0, c))

        cost = pl.CostEstimate(
            flops=2 * B_pad * P_pad * C_pad,
            transcendentals=B_pad * C_pad,
            bytes_accessed=(B_pad * P_pad * 2
                            + P_pad * C_pad * 2 * (num_b if num_c > 1 else 1)
                            + C_pad * 4 + B_pad * 4 + num_b * 8 * 128 * 4),
        )

        kernel = functools.partial(_local_ce_kernel, n_rows=B, tb=TB, tc=TC,
                                   bf16_exp=use_bf16_exp)

        per_tile = pl.pallas_call(
            kernel,
            out_shape=jax.ShapeDtypeStruct((num_b * 8, 128), jnp.float32),
            grid_spec=pltpu.PrefetchScalarGridSpec(
                num_scalar_prefetch=0,
                grid=(num_b, num_c),
                in_specs=[
                    pl.BlockSpec((TB, P_pad), lambda b, c: (b, 0)),   # features
                    w_spec,                                           # weight tile
                    pl.BlockSpec((1, TC), lambda b, c: (0, c)),       # bias tile
                    pl.BlockSpec((TB, 1), lambda b, c: (b, 0)),       # int labels
                ],
                out_specs=pl.BlockSpec((8, 128), lambda b, c: (b, 0)),
                scratch_shapes=[pltpu.VMEM((TB, 1), jnp.float32)] * 3,  # m, l, tgt
            ),
            compiler_params=pltpu.CompilerParams(
                dimension_semantics=("parallel", "arbitrary"),
                vmem_limit_bytes=vmem_limit,
            ),
            cost_estimate=cost,
        )(feats_p, w_p, b_p, lbl_p)

        # One scalar partial per batch tile (row 0 of each (8,128) block).
        return jnp.sum(per_tile[::8, 0]) / B

    return jax.jit(forward, static_argnames=("use_bf16_exp",))


if __name__ == "__main__":
    # Small shapes: batch=2, channels=4, spatial=16x16, projection_size=64 (4x4 pool), 10 classes.
    B, n_channels, H, W = 2, 4, 16, 16
    projection_size = 64          # -> AdaptiveAvgPool2d((4, 4)), flatten -> 64 features
    out_size = 10

    key = jax.random.PRNGKey(0)
    kz, kw, kb, ky = jax.random.split(key, 4)

    z = jax.random.normal(kz, (B, n_channels, H, W), dtype=jnp.float32)

    # Deterministic Linear params (nn.Linear default: U(-1/sqrt(in), 1/sqrt(in))).
    bound = 1.0 / np.sqrt(projection_size)
    # Stored transposed (P, out_size) so the kernel does feats @ W_t directly.
    weight_t = jax.random.uniform(kw, (projection_size, out_size),
                                  minval=-bound, maxval=bound, dtype=jnp.float32)
    bias = jax.random.uniform(kb, (out_size,), minval=-bound, maxval=bound,
                              dtype=jnp.float32)

    labels = jax.random.randint(ky, (B,), 0, out_size)
    y_onehot = jax.nn.one_hot(labels, out_size, dtype=jnp.float32)

    local_ce = make_local_cross_entropy(weight_t, bias, projection_size, n_channels)
    # use_bf16_exp=True is available for extra softmax throughput on v6e/v7x at
    # ~1e-2 relative tolerance; kept off here for tight parity with the reference.
    loss = local_ce(z, y_onehot, use_bf16_exp=False)
    loss = jax.block_until_ready(loss)

    # Pure-JAX reference of the same forward (matmul inputs quantized to bf16
    # like the kernel, accumulation in f32).
    pooled = z.reshape(B, n_channels, 4, 4, 4, 4).mean(axis=(3, 5))
    feats = pooled.reshape(B, -1)
    logits = (feats.astype(jnp.bfloat16).astype(jnp.float32)
              @ weight_t.astype(jnp.bfloat16).astype(jnp.float32)) + bias
    logp = jax.nn.log_softmax(logits, axis=-1)
    ref = -jnp.mean(jnp.take_along_axis(
        logp, jnp.argmax(y_onehot, axis=-1)[:, None], axis=1))
    assert np.allclose(np.asarray(loss), np.asarray(ref), rtol=1e-3, atol=1e-3), (loss, ref)

    print("KERNEL_OK")
</pallas_src>

<mosaic_0001>
module attributes {stable_mosaic.version = 11 : i64} {
  func.func @_local_ce_kernel(%arg0: i32, %arg1: i32, %arg2: memref<16x128xbf16, #tpu.memory_space<vmem>>, %arg3: memref<128x128xbf16, #tpu.memory_space<vmem>>, %arg4: memref<1x128xf32, #tpu.memory_space<vmem>>, %arg5: memref<16x1xi32, #tpu.memory_space<vmem>>, %arg6: memref<8x128xf32, #tpu.memory_space<vmem>>, %arg7: memref<16x1xf32, #tpu.memory_space<vmem>>, %arg8: memref<16x1xf32, #tpu.memory_space<vmem>>, %arg9: memref<16x1xf32, #tpu.memory_space<vmem>>) attributes {dimension_semantics = [#tpu.dimension_semantics<parallel>, #tpu.dimension_semantics<arbitrary>], iteration_bounds = array<i64: 1, 1>, scalar_prefetch = 0 : i64, scratch_operands = 3 : i64, tpu.core_type = #tpu.core_type<tc>, window_params = [{transform_indices = @transform_0, window_bounds = array<i64: 16, 128>}, {transform_indices = @transform_1, window_bounds = array<i64: 128, 128>}, {transform_indices = @transform_2, window_bounds = array<i64: 1, 128>}, {transform_indices = @transform_3, window_bounds = array<i64: 16, 1>}, {transform_indices = @transform_4, window_bounds = array<i64: 8, 128>}]} {
    %c0_i32 = arith.constant 0 : i32
    %0 = arith.cmpi eq, %arg1, %c0_i32 : i32
    %1 = arith.extui %0 : i1 to i32
    %c0_i32_0 = arith.constant 0 : i32
    %2 = arith.cmpi ne, %1, %c0_i32_0 : i32
    scf.if %2 {
      %cst_26 = arith.constant -1.000000e+30 : f32
      %42 = vector.broadcast %cst_26 : f32 to vector<16x1xf32>
      %c0_27 = arith.constant 0 : index
      %c0_28 = arith.constant 0 : index
      %43 = vector.load %arg7[%c0_27, %c0_28] : memref<16x1xf32, #tpu.memory_space<vmem>>, vector<16x1xf32>
      tpu.vector_store %arg7[%c0_27, %c0_28], %42 {strides = array<i32>} : memref<16x1xf32, #tpu.memory_space<vmem>>, vector<16x1xf32>,
      %cst_29 = arith.constant 0.000000e+00 : f32
      %44 = vector.broadcast %cst_29 : f32 to vector<16x1xf32>
      %c0_30 = arith.constant 0 : index
      %c0_31 = arith.constant 0 : index
      %45 = vector.load %arg8[%c0_30, %c0_31] : memref<16x1xf32, #tpu.memory_space<vmem>>, vector<16x1xf32>
      tpu.vector_store %arg8[%c0_30, %c0_31], %44 {strides = array<i32>} : memref<16x1xf32, #tpu.memory_space<vmem>>, vector<16x1xf32>,
      %cst_32 = arith.constant 0.000000e+00 : f32
      %46 = vector.broadcast %cst_32 : f32 to vector<16x1xf32>
      %c0_33 = arith.constant 0 : index
      %c0_34 = arith.constant 0 : index
      %47 = vector.load %arg9[%c0_33, %c0_34] : memref<16x1xf32, #tpu.memory_space<vmem>>, vector<16x1xf32>
      tpu.vector_store %arg9[%c0_33, %c0_34], %46 {strides = array<i32>} : memref<16x1xf32, #tpu.memory_space<vmem>>, vector<16x1xf32>,
    } else {
    }
    %c0 = arith.constant 0 : index
    %c0_1 = arith.constant 0 : index
    %3 = vector.load %arg2[%c0, %c0_1] : memref<16x128xbf16, #tpu.memory_space<vmem>>, vector<16x128xbf16>
    %c0_2 = arith.constant 0 : index
    %c0_3 = arith.constant 0 : index
    %4 = vector.load %arg3[%c0_2, %c0_3] : memref<128x128xbf16, #tpu.memory_space<vmem>>, vector<128x128xbf16>
    %cst = arith.constant dense<0.000000e+00> : vector<16x128xf32>
    %5 = tpu.matmul %3, %4, %cst {dimension_numbers = #tpu.dot_dimension_numbers<[1], [0], [0], [1], [0, 0, 1, 1], [], []>} : vector<16x128xbf16>, vector<128x128xbf16>, vector<16x128xf32> -> vector<16x128xf32>
    %c0_4 = arith.constant 0 : index
    %c0_5 = arith.constant 0 : index
    %6 = vector.load %arg4[%c0_4, %c0_5] : memref<1x128xf32, #tpu.memory_space<vmem>>, vector<1x128xf32>
    %7 = vector.broadcast %6 : vector<1x128xf32> to vector<16x128xf32>
    %8 = arith.addf %5, %7 : vector<16x128xf32>
    %9 = tpu.iota {dimensions = array<i32: 1>} : vector<16x128xi32>
    %c128_i32 = arith.constant 128 : i32
    %10 = arith.muli %arg1, %c128_i32 : i32
    %11 = vector.broadcast %10 : i32 to vector<16x128xi32>
    %12 = arith.addi %9, %11 : vector<16x128xi32>
    %c0_6 = arith.constant 0 : index
    %c0_7 = arith.constant 0 : index
    %13 = vector.load %arg5[%c0_6, %c0_7] : memref<16x1xi32, #tpu.memory_space<vmem>>, vector<16x1xi32>
    %c0_8 = arith.constant 0 : index
    %c0_9 = arith.constant 0 : index
    %14 = vector.load %arg9[%c0_8, %c0_9] : memref<16x1xf32, #tpu.memory_space<vmem>>, vector<16x1xf32>
    %15 = vector.broadcast %13 : vector<16x1xi32> to vector<16x128xi32>
    %16 = arith.cmpi eq, %12, %15 : vector<16x128xi32>
    %cst_10 = arith.constant 0.000000e+00 : f32
    %17 = vector.broadcast %cst_10 : f32 to vector<16x128xf32>
    %18 = arith.select %16, %8, %17 : vector<16x128xi1>, vector<16x128xf32>
    %cst_11 = arith.constant dense<0.000000e+00> : vector<16xf32>
    %19 = vector.multi_reduction <add>, %18, %cst_11 [1] : vector<16x128xf32> to vector<16xf32>
    %20 = vector.shape_cast %19 : vector<16xf32> to vector<16x1xf32>
    %21 = arith.addf %14, %20 : vector<16x1xf32>
    %c0_12 = arith.constant 0 : index
    %c0_13 = arith.constant 0 : index
    %22 = vector.load %arg9[%c0_12, %c0_13] : memref<16x1xf32, #tpu.memory_space<vmem>>, vector<16x1xf32>
    tpu.vector_store %arg9[%c0_12, %c0_13], %21 {strides = array<i32>} : memref<16x1xf32, #tpu.memory_space<vmem>>, vector<16x1xf32>,
    %c0_14 = arith.constant 0 : index
    %c0_15 = arith.constant 0 : index
    %23 = vector.load %arg7[%c0_14, %c0_15] : memref<16x1xf32, #tpu.memory_space<vmem>>, vector<16x1xf32>
    %cst_16 = arith.constant dense<0xFF800000> : vector<16xf32>
    %24 = vector.multi_reduction <maximumf>, %8, %cst_16 [1] : vector<16x128xf32> to vector<16xf32>
    %25 = vector.shape_cast %24 : vector<16xf32> to vector<16x1xf32>
    %26 = arith.maximumf %23, %25 : vector<16x1xf32>
    %27 = vector.broadcast %26 : vector<16x1xf32> to vector<16x128xf32>
    %28 = arith.subf %8, %27 : vector<16x128xf32>
    %29 = math.exp %28 : vector<16x128xf32>
    %cst_17 = arith.constant dense<0.000000e+00> : vector<16xf32>
    %30 = vector.multi_reduction <add>, %29, %cst_17 [1] : vector<16x128xf32> to vector<16xf32>
    %31 = vector.shape_cast %30 : vector<16xf32> to vector<16x1xf32>
    %c0_18 = arith.constant 0 : index
    %c0_19 = arith.constant 0 : index
    %32 = vector.load %arg8[%c0_18, %c0_19] : memref<16x1xf32, #tpu.memory_space<vmem>>, vector<16x1xf32>
    %33 = arith.subf %23, %26 : vector<16x1xf32>
    %34 = math.exp %33 : vector<16x1xf32>
    %35 = arith.mulf %32, %34 : vector<16x1xf32>
    %36 = arith.addf %35, %31 : vector<16x1xf32>
    %c0_20 = arith.constant 0 : index
    %c0_21 = arith.constant 0 : index
    %37 = vector.load %arg8[%c0_20, %c0_21] : memref<16x1xf32, #tpu.memory_space<vmem>>, vector<16x1xf32>
    tpu.vector_store %arg8[%c0_20, %c0_21], %36 {strides = array<i32>} : memref<16x1xf32, #tpu.memory_space<vmem>>, vector<16x1xf32>,
    %c0_22 = arith.constant 0 : index
    %c0_23 = arith.constant 0 : index
    %38 = vector.load %arg7[%c0_22, %c0_23] : memref<16x1xf32, #tpu.memory_space<vmem>>, vector<16x1xf32>
    tpu.vector_store %arg7[%c0_22, %c0_23], %26 {strides = array<i32>} : memref<16x1xf32, #tpu.memory_space<vmem>>, vector<16x1xf32>,
    %c0_i32_24 = arith.constant 0 : i32
    %39 = arith.cmpi eq, %arg1, %c0_i32_24 : i32
    %40 = arith.extui %39 : i1 to i32
    %c0_i32_25 = arith.constant 0 : i32
    %41 = arith.cmpi ne, %40, %c0_i32_25 : i32
    scf.if %41 {
      %42 = tpu.iota {dimensions = array<i32: 0>} : vector<16x1xi32>
      %c16_i32 = arith.constant 16 : i32
      %43 = arith.muli %arg0, %c16_i32 : i32
      %44 = vector.broadcast %43 : i32 to vector<16x1xi32>
      %45 = arith.addi %42, %44 : vector<16x1xi32>
      %c2_i32 = arith.constant 2 : i32
      %46 = vector.broadcast %c2_i32 : i32 to vector<16x1xi32>
      %47 = arith.cmpi slt, %45, %46 : vector<16x1xi32>
      %48 = arith.extui %47 : vector<16x1xi1> to vector<16x1xi32>
      %49 = arith.sitofp %48 : vector<16x1xi32> to vector<16x1xf32>
      %c0_26 = arith.constant 0 : index
      %c0_27 = arith.constant 0 : index
      %50 = vector.load %arg7[%c0_26, %c0_27] : memref<16x1xf32, #tpu.memory_space<vmem>>, vector<16x1xf32>
      %c0_28 = arith.constant 0 : index
      %c0_29 = arith.constant 0 : index
      %51 = vector.load %arg8[%c0_28, %c0_29] : memref<16x1xf32, #tpu.memory_space<vmem>>, vector<16x1xf32>
      %52 = math.log %51 : vector<16x1xf32>
      %53 = arith.addf %50, %52 : vector<16x1xf32>
      %c0_30 = arith.constant 0 : index
      %c0_31 = arith.constant 0 : index
      %54 = vector.load %arg9[%c0_30, %c0_31] : memref<16x1xf32, #tpu.memory_space<vmem>>, vector<16x1xf32>
      %55 = arith.subf %53, %54 : vector<16x1xf32>
      %56 = arith.mulf %55, %49 : vector<16x1xf32>
      %cst_32 = arith.constant dense<0.000000e+00> : vector<1xf32>
      %57 = vector.multi_reduction <add>, %56, %cst_32 [0] : vector<16x1xf32> to vector<1xf32>
      %58 = vector.shape_cast %57 : vector<1xf32> to vector<1x1xf32>
      %59 = vector.shape_cast %58 : vector<1x1xf32> to vector<1x1xf32>
      %60 = vector.broadcast %59 : vector<1x1xf32> to vector<8x128xf32>
      %c0_33 = arith.constant 0 : index
      %c0_34 = arith.constant 0 : index
      %61 = vector.load %arg6[%c0_33, %c0_34] : memref<8x128xf32, #tpu.memory_space<vmem>>, vector<8x128xf32>
      tpu.vector_store %arg6[%c0_33, %c0_34], %60 {strides = array<i32>} : memref<8x128xf32, #tpu.memory_space<vmem>>, vector<8x128xf32>,
    } else {
    }
    return
  }
  func.func @transform_0(%arg0: i32, %arg1: i32) -> (i32, i32) {
    %c0_i32 = arith.constant 0 : i32
    %c0_i32_0 = arith.constant 0 : i32
    return %arg0, %c0_i32 : i32, i32
  }
  func.func @transform_1(%arg0: i32, %arg1: i32) -> (i32, i32) {
    %c0_i32 = arith.constant 0 : i32
    %c0_i32_0 = arith.constant 0 : i32
    return %c0_i32, %arg1 : i32, i32
  }
  func.func @transform_2(%arg0: i32, %arg1: i32) -> (i32, i32) {
    %c0_i32 = arith.constant 0 : i32
    %c0_i32_0 = arith.constant 0 : i32
    return %c0_i32, %arg1 : i32, i32
  }
  func.func @transform_3(%arg0: i32, %arg1: i32) -> (i32, i32) {
    %c0_i32 = arith.constant 0 : i32
    %c0_i32_0 = arith.constant 0 : i32
    return %arg0, %c0_i32 : i32, i32
  }
  func.func @transform_4(%arg0: i32, %arg1: i32) -> (i32, i32) {
    %c0_i32 = arith.constant 0 : i32
    %c0_i32_0 = arith.constant 0 : i32
    return %arg0, %c0_i32 : i32, i32
  }
}

</mosaic_0001>

<bundles_post_ra>
// kernel: forward.1
= control target key start
LH: loop header
LB: loop body
LE: loop exit
PB: predicated region body
PF: predicated region fallthrough
CT: control target
= control target key end

     0   :  { %v306_v2 = vmov 0   ;;  %v118_v12 = vlaneseq  ;;  %v307_v14 = vmov 0.0   ;;  %vm21_vm1 = vcmask 7168   ;;  %s390_s1 = inlined_call_operand.vmem [shape: bf16[128,128], index: 1, kind: input, shape index: {}]   ;;  %s391_s3 = inlined_call_operand.vmem [shape: s32[16,1], index: 3, kind: input, shape index: {}]   ;;  %s392_s2 = inlined_call_operand.vmem [shape: f32[1,128], index: 2, kind: input, shape index: {}]   ;;  %s393_s0 = inlined_call_operand.vmem [shape: bf16[16,128], index: 0, kind: input, shape index: {}]   ;;  %s394_s4 = inlined_call_operand.vmem [shape: f32[8,128], index: 4, kind: output, shape index: {}]  }
   0x1   :  { %v286_v0 = vld [vmem:[%s390_s1 + $0x38] sm:$0xff]  ;;  %v285_v1 = vld [vmem:[%s390_s1 + $0x30] sm:$0xff]  ;;  %291 = vset.pattern.permute.xlu2 %v306_v2  ;;  %v123_v3 = vld [vmem:[%s391_s3] sm:$0xff]  ;;  %290 = vset.pattern.permute.xlu1 %v306_v2  ;;  %v308_v16 = vmov -1e+30   ;;  %24 = vst.msk [vmem:[#allocation3] sm:$0xff] %vm21_vm1, %v307_v14 }
   0x2   :  { %104 = vmatpush.bf16.msra.mxu0 %v286_v0  ;;  %292 = vset.pattern.permute.xlu0 %v306_v2  ;;  %v284_v4 = vld [vmem:[%s390_s1 + $0x28] sm:$0xff]  ;;  %v283_v6 = vld [vmem:[%s390_s1 + $0x20] sm:$0xff]  ;;  %v282_v7 = vld [vmem:[%s390_s1 + $0x18] sm:$0xff]  ;;  %v194_v13 = vshrl.u32 %v118_v12, 7  ;;  %22 = vst.msk [vmem:[#allocation2] sm:$0xff] %vm21_vm1, %v308_v16  ;;  %v119_v17 = vand.u32 127, %v118_v12 }
   0x3   :  { %128 = vperm.xlu2 %291, %v123_v3   ;;  %v124_v5 = vld [vmem:[%s391_s3 + $0x8] sm:$0xff]  ;;  %v281_v8 = vld [vmem:[%s390_s1 + $0x10] sm:$0xff]  ;;  %v279_v10 = vld [vmem:[%s390_s1] sm:$0xff]  ;;  %23 = vst.msk [vmem:[#allocation2 + $0x8] sm:$0xff] %vm21_vm1, %v308_v16 }
   0x4   :  { %v280_v9 = vld [vmem:[%s390_s1 + $0x8] sm:$0xff]  ;;  %v278_v11 = vld [vmem:[%s393_s0] sm:$0xff]  ;;  %vm200_vm0 = vcmp.lt.s32.totalorder %v194_v13, 2  ;;  %25 = vst.msk [vmem:[#allocation3 + $0x8] sm:$0xff] %vm21_vm1, %v307_v14 }
   0x5   :  { %v367_v15 = vsel %vm200_vm0, 1.0, %v307_v14  ;;  %26 = vst.msk [vmem:[#allocation4] sm:$0xff] %vm21_vm1, %v307_v14  ;;  %v293_v18 = vld [vmem:[%s392_s2] ss:$0 sm:$0xff] }
   0x6   :  { %105 = vmatpush.bf16.msra.mxu0 %v285_v1  ;;  %27 = vst.msk [vmem:[#allocation4 + $0x8] sm:$0xff] %vm21_vm1, %v307_v14 }
   0x8   :  { %v174_v49 = vld [vmem:[#allocation3] sm:$0xff] }
   0x9   :  { %v146_v26 = vld [vmem:[#allocation2] sm:$0xff] }
   0xa   :  { %106 = vmatpush.bf16.msra.mxu0 %v284_v4  ;;  %v147_v33 = vld [vmem:[#allocation2 + $0x8] sm:$0xff] }
   0xb   :  { %131 = vperm.xlu2 %291, %v124_v5   ;;  %v175_v54 = vld [vmem:[#allocation3 + $0x8] sm:$0xff] }
   0xc   :  { %v125_v27 = vld [vmem:[#allocation4] sm:$0xff] }
   0xd   :  { %v126_v55 = vld [vmem:[#allocation4 + $0x8] sm:$0xff] }
   0xe   :  { %107 = vmatpush.bf16.msra.mxu0 %v283_v6 }
  0x12   :  { %108 = vmatpush.bf16.msra.mxu0 %v282_v7 }
  0x16   :  { %109 = vmatpush.bf16.msra.mxu0 %v281_v8 }
  0x1a   :  { %110 = vmatpush.bf16.msra.mxu0 %v280_v9 }
  0x1e   :  { %111 = vmatpush.bf16.msra.mxu0 %v279_v10 }
  0x21   :  { %112 = vmatmul.bf16.vlgmr.msra.gmra.mxu0 %v278_v11 }
  0x5d   :  { %v129_v19 = vpop.permute.xlu2 %128 }
  0x5e   :  { %vm133_vm2 = vcmp.eq.s32.totalorder %v119_v17, %v129_v19 }
  0x65   :  { %v132_v25 = vpop.permute.xlu2 %131 }
  0x66   :  { %vm134_vm3 = vcmp.eq.s32.totalorder %v119_v17, %v132_v25 }
  0x9e   :  { %v113_v20 = vpop.f32.mrf.mxu0 }
  0x9f   :  { %v114_v21 = vadd.f32 %v293_v18, %v113_v20 }
  0xa1   :  { %148 = vmax.xlane.f32.xlu0 %v114_v21  ;;  %v135_v22 = vsel %vm133_vm2, %v114_v21, 0.0 }
  0xa2   :  { %137 = vadd.xlane.f32.xlu2 %v135_v22 }
  0xa6   :  { %v115_v23 = vpop.f32.mrf.mxu0 }
  0xa7   :  { %v116_v24 = vadd.f32 %v293_v18, %v115_v23 }
  0xa9   :  { %150 = vmax.xlane.f32.xlu0 %v116_v24  ;;  %v136_v45 = vsel %vm134_vm3, %v116_v24, 0.0 }
 0x114   :  { %v149_v28 = vpop.xlane.xlu0 %148 }
 0x115   :  { %v152_v29 = vmax.f32 %v146_v26, %v149_v28  ;;  %v138_v30 = vpop.xlane.xlu2 %137 }
 0x116   :  { %v141_v31 = vadd.f32 %v138_v30, %v125_v27 }
 0x117   :  { %v176_v32 = vsub.f32 %v146_v26, %v152_v29  ;;  %188 = vst.msk [vmem:[#allocation2] sm:$0xff] %vm21_vm1, %v152_v29  ;;  %156 = vperm.xlu1 %290, %v152_v29  }
 0x118   :  { %144 = vst.msk [vmem:[#allocation4] sm:$0xff] %vm21_vm1, %v141_v31 }
 0x119   :  { %v178_v46 = vmul.f32 1.442695, %v176_v32 }
 0x11c   :  { %v151_v34 = vpop.xlane.xlu0 %150 }
 0x11d   :  { %v153_v35 = vmax.f32 %v147_v33, %v151_v34 }
 0x11e   :  { %v206_v1 = vld [vmem:[#allocation2] sm:$0xff] }
 0x11f   :  { %v177_v36 = vsub.f32 %v147_v33, %v153_v35  ;;  %189 = vst.msk [vmem:[#allocation2 + $0x8] sm:$0xff] %vm21_vm1, %v153_v35  ;;  %161 = vperm.xlu1 %290, %v153_v35   ;;  %v216_v4 = vld [vmem:[#allocation4] sm:$0xff] }
 0x121   :  { %v180_v47 = vmul.f32 1.442695, %v177_v36 }
 0x126   :  { %v207_v7 = vld [vmem:[#allocation2 + $0x8] sm:$0xff] }
 0x189   :  { %v157_v37 = vpop.permute.xlu1 %156 }
 0x18a   :  { %v164_v38 = vsub.f32 %v114_v21, %v157_v37 }
 0x18c   :  { %v166_v39 = vmul.f32 1.442695, %v164_v38 }
 0x18e   :  { %294 = vpow2.f32 %v166_v39 }
 0x191   :  { %v162_v40 = vpop.permute.xlu1 %161 }
 0x192   :  { %v165_v41 = vsub.f32 %v116_v24, %v162_v40 }
 0x194   :  { %v295_v42 = vpop.eup %294  ;;  %v168_v43 = vmul.f32 1.442695, %v165_v41 }
 0x195   :  { %170 = vadd.xlane.f32.xlu0 %v295_v42 }
 0x196   :  { %296 = vpow2.f32 %v168_v43 }
 0x197   :  { %298 = vpow2.f32 %v178_v46 }
 0x198   :  { %300 = vpow2.f32 %v180_v47 }
 0x19c   :  { %v297_v44 = vpop.eup %296 }
 0x19d   :  { %139 = vadd.xlane.f32.xlu0 %v136_v45  ;;  %172 = vadd.xlane.f32.xlu1 %v297_v44  ;;  %v299_v48 = vpop.eup %298 }
 0x19e   :  { %v182_v50 = vmul.f32 %v299_v48, %v174_v49  ;;  %v301_v53 = vpop.eup %300 }
 0x19f   :  { %v183_v56 = vmul.f32 %v301_v53, %v175_v54 }
 0x208   :  { %v171_v51 = vpop.xlane.xlu0 %170 }
 0x209   :  { %v184_v52 = vadd.f32 %v182_v50, %v171_v51 }
 0x20b   :  { %186 = vst.msk [vmem:[#allocation3] sm:$0xff] %vm21_vm1, %v184_v52 }
 0x210   :  { %v173_v57 = vpop.xlane.xlu1 %172  ;;  %v140_v58 = vpop.xlane.xlu0 %139 }
 0x211   :  { %v185_v59 = vadd.f32 %v183_v56, %v173_v57  ;;  %v142_v60 = vadd.f32 %v140_v58, %v126_v55 }
 0x212   :  { %v208_v61 = vld [vmem:[#allocation3] sm:$0xff] }
 0x213   :  { %187 = vst.msk [vmem:[#allocation3 + $0x8] sm:$0xff] %vm21_vm1, %v185_v59  ;;  %302 = vlog2.f32 %v208_v61 }
 0x214   :  { %145 = vst.msk [vmem:[#allocation4 + $0x8] sm:$0xff] %vm21_vm1, %v142_v60 }
 0x219   :  { %v303_v62 = vpop.eup %302 }
 0x21a   :  { %v209_v63 = vld [vmem:[#allocation3 + $0x8] sm:$0xff]  ;;  %v211_v0 = vmul.f32 0.6931472, %v303_v62 }
 0x21b   :  { %304 = vlog2.f32 %v209_v63  ;;  %v217_v9 = vld [vmem:[#allocation4 + $0x8] sm:$0xff] }
 0x21c   :  { %v214_v2 = vadd.f32 %v211_v0, %v206_v1 }
 0x21e   :  { %v218_v6 = vsub.f32 %v214_v2, %v216_v4 }
 0x220   :  { %v220_v11 = vmul.f32 %v367_v15, %v218_v6 }
 0x221   :  { %v305_v3 = vpop.eup %304 }
 0x222   :  { %v213_v5 = vmul.f32 0.6931472, %v305_v3  ;;  %v222_v13 = vsel %vm21_vm1, %v220_v11, 0.0 }
 0x224   :  { %v215_v8 = vadd.f32 %v213_v5, %v207_v7 }
 0x226   :  { %v219_v10 = vsub.f32 %v215_v8, %v217_v9 }
 0x228   :  { %v221_v12 = vmul.f32 0.0, %v219_v10 }
 0x22a   :  { %v223_v14 = vsel %vm21_vm1, %v221_v12, 0.0 }
 0x22b   :  { %v224_v16 = vadd.f32 %v223_v14, %v222_v13 }
 0x22d   :  { %v225_v17 = vrot.slane %v224_v16, 4 }
 0x22f   :  { %v226_v18 = vadd.f32 %v225_v17, %v224_v16 }
 0x231   :  { %v227_v19 = vrot.slane %v226_v18, 2 }
 0x233   :  { %v228_v20 = vadd.f32 %v227_v19, %v226_v18 }
 0x235   :  { %v229_v21 = vrot.slane %v228_v20, 1 }
 0x237   :  { %v230_v22 = vadd.f32 %v229_v21, %v228_v20 }
 0x239   :  { %233 = vperm.xlu0 %292, %v230_v22  }
 0x2ab   :  { %v234_v23 = vpop.permute.xlu0 %233 }
 0x2ac   :  { %236 = vst [vmem:[%s394_s4] sm:$0xff] %v234_v23 }

</bundles_post_ra>
